<compile_context>
chip_gen: v7x
topology: tpu7x:2x2x1
jax: 0.10.0
libtpu: 0.0.40
codegen_flags: <defaults>
</compile_context>

<pallas_src>
import jax
import jax.numpy as jnp
from jax.experimental import pallas as pl
from jax.experimental.pallas import tpu as pltpu


_SINGLE_BLOCK_BYTES = 1 << 20   # keep the grid=(1,) fast path to tiny inputs: its
                                # input DMA is fully exposed and it holds several
                                # live [N,B,C]-sized f32 temporaries.


def _vmem_budgets():
    """(per-(tb,C)-tile f32 byte budget, vmem_limit_bytes), keyed off physical VMEM.

    Working set of the tiled kernel ~= 8x the (tb, C) f32 tile:
      2 inputs x 2 pipeline buffers (4x) + logp scratch (1x) + ~3x elementwise temps.
    v5e/v6e have 128 MiB VMEM per TensorCore; v7x only has 64 MiB, so shrink there.
    """
    try:
        vmem = pltpu.get_tpu_info().vmem_capacity_bytes
    except Exception:                       # fall back to the smallest known chip
        vmem = 64 << 20
    if vmem >= (100 << 20):                 # v5e / v6e (128 MiB physical)
        return 4 << 20, 64 << 20
    return 3 << 20, 40 << 20                # v7x (64 MiB physical per TC)


# ----------------------------------------------------------------------------- #
# Kernels
# ----------------------------------------------------------------------------- #

def _dml_single_kernel(idx_ref, outs_ref, out_ref):
    """One grid step: everything resident in VMEM, vectorized over the model axis."""
    idx = idx_ref[0]
    outs = outs_ref[...].astype(jnp.float32)                # [N, B, C]
    n = outs.shape[0]

    # Student log-softmax -- computed exactly once (cheap dynamic vld from VMEM).
    my = outs_ref[idx].astype(jnp.float32)                  # [B, C]
    m = jnp.max(my, axis=-1, keepdims=True)
    lse = jnp.log(jnp.sum(jnp.exp(my - m), axis=-1, keepdims=True)) + m
    logp = my - lse

    # Peer softmaxes, vectorized over the model axis.
    mo = jnp.max(outs, axis=-1, keepdims=True)              # [N, B, 1]
    sh = outs - mo
    e = jnp.exp(sh)
    denom = jnp.sum(e, axis=-1, keepdims=True)              # [N, B, 1]
    logq = sh - jnp.log(denom)
    q = e * pl.reciprocal(denom)                            # per-row reciprocal (exact)

    kl = q * (logq - logp[None, :, :])                      # [N, B, C]
    # Self-row mask from an [N,1,1] iota (no full [N,B,C] int32 temporary).
    row = jax.lax.broadcasted_iota(jnp.int32, (n, 1, 1), 0)
    kl = jnp.where(row == idx, 0.0, kl)                     # drop the self row
    out_ref[...] = jnp.zeros_like(out_ref) + jnp.sum(kl)    # lane-dense scalar slab


def _dml_tiled_kernel(idx_ref, peers_ref, my_ref, peer_ref, out_ref,
                      logp_ref, acc_ref):
    """grid = (batch_tiles, N-1 peers); the self peer is never visited."""
    del idx_ref, peers_ref      # consumed only by the index_maps
    j = pl.program_id(1)

    @pl.when(j == 0)
    def _():
        # Hoisted student log-softmax for this batch tile + accumulator init.
        my = my_ref[0].astype(jnp.float32)                  # [tb, C]
        m = jnp.max(my, axis=-1, keepdims=True)
        lse = jnp.log(jnp.sum(jnp.exp(my - m), axis=-1, keepdims=True)) + m
        logp_ref[...] = my - lse
        acc_ref[...] = jnp.zeros_like(acc_ref)

    oth = peer_ref[0].astype(jnp.float32)                   # [tb, C]
    mo = jnp.max(oth, axis=-1, keepdims=True)
    sh = oth - mo
    e = jnp.exp(sh)
    denom = jnp.sum(e, axis=-1, keepdims=True)
    logq = sh - jnp.log(denom)
    q = e * pl.reciprocal(denom)                            # per-row reciprocal (exact)
    acc_ref[...] += jnp.sum(q * (logq - logp_ref[...]))     # tiny (1,1) accumulator

    @pl.when(j == pl.num_programs(1) - 1)
    def _():
        # Single lane-dense store per batch tile (no per-step slab ld/add/st).
        out_ref[...] = jnp.broadcast_to(acc_ref[...], out_ref.shape)


# ----------------------------------------------------------------------------- #
# pallas_call wrappers
# ----------------------------------------------------------------------------- #

def _single_block_call(idx_arr, outputs):
    N, B, C = outputs.shape
    itemsize = jnp.dtype(outputs.dtype).itemsize
    cost = pl.CostEstimate(
        flops=int(8 * N * B * C),
        transcendentals=int(2 * N * B * C),
        bytes_accessed=int(N * B * C * itemsize + 8 * 128 * 4 + 4),
    )
    out = pl.pallas_call(
        _dml_single_kernel,
        out_shape=jax.ShapeDtypeStruct((8, 128), jnp.float32),
        grid=(1,),
        in_specs=[
            pl.BlockSpec(memory_space=pltpu.MemorySpace.SMEM),     # idx (scalar)
            pl.BlockSpec((N, B, C), lambda i: (0, 0, 0)),          # all logits
        ],
        out_specs=pl.BlockSpec((8, 128), lambda i: (0, 0)),
        compiler_params=pltpu.CompilerParams(
            dimension_semantics=("arbitrary",)),
        cost_estimate=cost,
    )(idx_arr, outputs)
    return out[0, 0]


def _pick_batch_tile(B, C, tile_budget_bytes):
    """Batch tile: multiple of 8, divides B, (tb, C) f32 tile under budget.

    Prefers a split yielding >= 2 batch tiles so the 'parallel' batch grid axis can
    be sharded across both v7x TensorCores (megacore); one extra grid step of
    ~0.35 us is negligible next to a multi-MiB tile's DMA/EUP cost.
    """
    cands = [t for t in range(8, B + 1, 8)
             if B % t == 0 and t * C * 4 <= tile_budget_bytes]
    multi = [t for t in cands if t < B]         # yields >= 2 batch tiles
    if multi:
        return max(multi)
    if cands:
        return max(cands)
    # TODO(synk): huge-C fallback (see module docstring) -- needs class tiling.
    return B


def _tiled_call(idx_arr, outputs, batch_tile=None):
    N, B, C = outputs.shape
    tile_budget, vmem_limit = _vmem_budgets()
    tb = batch_tile if batch_tile is not None else _pick_batch_tile(B, C, tile_budget)
    assert B % tb == 0, "batch tile must divide the batch"
    num_btiles = B // tb

    # Peer index list: every model index except idx (self peer never DMA'd/computed).
    j_ids = jnp.arange(N - 1, dtype=jnp.int32)
    peers = jnp.where(j_ids < idx_arr[0], j_ids, j_ids + 1)

    itemsize = jnp.dtype(outputs.dtype).itemsize
    cost = pl.CostEstimate(
        flops=int(8 * (N - 1) * B * C + 6 * B * C),
        transcendentals=int(2 * N * B * C),
        bytes_accessed=int(N * B * C * itemsize + num_btiles * 8 * 128 * 4),
    )

    out = pl.pallas_call(
        _dml_tiled_kernel,
        out_shape=jax.ShapeDtypeStruct((num_btiles, 8, 128), jnp.float32),
        grid_spec=pltpu.PrefetchScalarGridSpec(
            num_scalar_prefetch=2,
            grid=(num_btiles, N - 1),
            in_specs=[
                # Student logits: block index constant over j => fetched once per
                # batch tile (no duplicate HBM array, no per-step re-DMA).
                pl.BlockSpec((1, tb, C),
                             lambda b, j, idx_r, peers_r: (idx_r[0], b, 0)),
                # Peer logits, indexed through the prefetched peer list.
                # (If xprof shows exposed peer DMA after the tile-size bump,
                #  pipeline_mode=pl.Buffered(3) on this spec is the next lever.)
                pl.BlockSpec((1, tb, C),
                             lambda b, j, idx_r, peers_r: (peers_r[j], b, 0)),
            ],
            out_specs=pl.BlockSpec((1, 8, 128),
                                   lambda b, j, idx_r, peers_r: (b, 0, 0)),
            scratch_shapes=[
                pltpu.VMEM((tb, C), jnp.float32),    # hoisted student log-softmax
                pltpu.VMEM((1, 1), jnp.float32),     # running partial-KL scalar
            ],
        ),
        compiler_params=pltpu.CompilerParams(
            dimension_semantics=("parallel", "arbitrary"),
            vmem_limit_bytes=int(vmem_limit)),
        cost_estimate=cost,
    )(idx_arr, peers, outputs, outputs)
    return jnp.sum(out[:, 0, 0])


def deep_mutual_learning(idx, outputs, *, force_tiled=False, batch_tile=None):
    """outputs: [N, B, C] logits in their native dtype (f32/bf16 both fine; the
    kernels upcast to f32 in VMEM, so bf16 halves HBM traffic on the mem-bound
    path). Returns the scalar DML KD loss (float32)."""
    outputs = jnp.asarray(outputs)          # dtype-preserving; no HBM upcast
    N, B, C = outputs.shape
    if N == 1:
        # The PyTorch module would raise ZeroDivisionError (0/0) here; define as 0.
        return jnp.float32(0.0)

    idx_arr = jnp.asarray(idx, dtype=jnp.int32).reshape((1,))

    # Quirky trailing division from the module: /(N-1) unless the last loop index
    # was 1 (N == 2), which would be a no-op /1 anyway. Batchmean folded in too.
    last_i = N - 1
    divisor = float(last_i) if last_i != 1 else 1.0
    scale = jnp.float32(1.0 / (divisor * B))

    if not force_tiled and outputs.size * 4 <= _SINGLE_BLOCK_BYTES:
        raw = _single_block_call(idx_arr, outputs)
    else:
        raw = _tiled_call(idx_arr, outputs, batch_tile=batch_tile)
    return raw * scale


# ----------------------------------------------------------------------------- #
# Reference + self-test
# ----------------------------------------------------------------------------- #

def _reference_dml(idx, outputs):
    N, B, _ = outputs.shape
    my = outputs[idx]
    logp = jax.nn.log_softmax(my.astype(jnp.float32), axis=-1)
    loss = jnp.float32(0.0)
    for i in range(N):
        if i != idx:
            q = jax.nn.softmax(outputs[i].astype(jnp.float32), axis=1)
            loss = loss + jnp.sum(q * (jnp.log(q) - logp)) / B
    last_i = N - 1
    if last_i != 1:
        loss = loss / last_i
    return loss


if __name__ == "__main__":
    key = jax.random.PRNGKey(0)

    # Case 1: N=4 peer models, batch 8, 32 classes -> single-block fast path.
    N, B, C = 4, 8, 32
    idx = 1
    outputs = jax.random.normal(key, (N, B, C), dtype=jnp.float32) * 2.0
    loss = jax.block_until_ready(deep_mutual_learning(idx, outputs))
    ref = jax.block_until_ready(_reference_dml(idx, outputs))
    assert jnp.allclose(loss, ref, rtol=1e-4, atol=1e-5), (loss, ref)

    # Case 2: same inputs through the tiled (peer-loop) path.
    loss_t = jax.block_until_ready(
        deep_mutual_learning(idx, outputs, force_tiled=True))
    assert jnp.allclose(loss_t, ref, rtol=1e-4, atol=1e-5), (loss_t, ref)

    # Case 3: tiled path with 2 batch tiles and N=2 (module's no-division branch).
    N2, B2, C2 = 2, 16, 32
    out2 = jax.random.normal(jax.random.PRNGKey(0), (N2, B2, C2), jnp.float32) * 2.0
    loss2 = jax.block_until_ready(
        deep_mutual_learning(0, out2, force_tiled=True, batch_tile=8))
    ref2 = jax.block_until_ready(_reference_dml(0, out2))
    assert jnp.allclose(loss2, ref2, rtol=1e-4, atol=1e-5), (loss2, ref2)

    # Case 4: tiled path, auto tile pick (prefers 2 batch tiles), lane-dense C=128.
    N3, B3, C3 = 3, 32, 128
    out3 = jax.random.normal(jax.random.PRNGKey(1), (N3, B3, C3), jnp.float32) * 2.0
    loss3 = jax.block_until_ready(
        deep_mutual_learning(2, out3, force_tiled=True))
    ref3 = jax.block_until_ready(_reference_dml(2, out3))
    assert jnp.allclose(loss3, ref3, rtol=1e-4, atol=1e-5), (loss3, ref3)

    # Case 5: bf16 logits stay bf16 in HBM (in-kernel f32 upcast only).
    out_bf16 = outputs.astype(jnp.bfloat16)
    loss_b = jax.block_until_ready(deep_mutual_learning(idx, out_bf16))
    ref_b = jax.block_until_ready(_reference_dml(idx, out_bf16))
    assert jnp.allclose(loss_b, ref_b, rtol=1e-3, atol=1e-4), (loss_b, ref_b)

    print("KERNEL_OK")
</pallas_src>

<mosaic_0001>
module attributes {stable_mosaic.version = 11 : i64} {
  func.func @_dml_single_kernel(%arg0: i32, %arg1: memref<1xi32, #tpu.memory_space<smem>>, %arg2: memref<4x8x32xf32, #tpu.memory_space<vmem>>, %arg3: memref<8x128xf32, #tpu.memory_space<vmem>>) attributes {dimension_semantics = [#tpu.dimension_semantics<arbitrary>], iteration_bounds = array<i64: 1>, scalar_prefetch = 0 : i64, scratch_operands = 0 : i64, tpu.core_type = #tpu.core_type<tc>, window_params = [{transform_indices = @transform_0, window_bounds = array<i64: 1>}, {pipeline_mode = #tpu.pipeline_mode<synchronous>, transform_indices = @transform_1, window_bounds = array<i64: 4, 8, 32>}, {pipeline_mode = #tpu.pipeline_mode<synchronous>, transform_indices = @transform_2, window_bounds = array<i64: 8, 128>}]} {
    %c0 = arith.constant 0 : index
    %0 = memref.load %arg1[%c0] : memref<1xi32, #tpu.memory_space<smem>>
    %c0_0 = arith.constant 0 : index
    %c0_1 = arith.constant 0 : index
    %c0_2 = arith.constant 0 : index
    %1 = vector.load %arg2[%c0_0, %c0_1, %c0_2] : memref<4x8x32xf32, #tpu.memory_space<vmem>>, vector<4x8x32xf32>
    %2 = arith.index_cast %0 : i32 to index
    %c0_3 = arith.constant 0 : index
    %c0_4 = arith.constant 0 : index
    %3 = vector.load %arg2[%2, %c0_3, %c0_4] : memref<4x8x32xf32, #tpu.memory_space<vmem>>, vector<1x8x32xf32>
    %4 = vector.shape_cast %3 : vector<1x8x32xf32> to vector<8x32xf32>
    %cst = arith.constant dense<0xFF800000> : vector<8xf32>
    %5 = vector.multi_reduction <maximumf>, %4, %cst [1] : vector<8x32xf32> to vector<8xf32>
    %6 = vector.shape_cast %5 : vector<8xf32> to vector<8x1xf32>
    %7 = vector.broadcast %6 : vector<8x1xf32> to vector<8x32xf32>
    %8 = arith.subf %4, %7 : vector<8x32xf32>
    %9 = math.exp %8 : vector<8x32xf32>
    %cst_5 = arith.constant dense<0.000000e+00> : vector<8xf32>
    %10 = vector.multi_reduction <add>, %9, %cst_5 [1] : vector<8x32xf32> to vector<8xf32>
    %11 = vector.shape_cast %10 : vector<8xf32> to vector<8x1xf32>
    %12 = math.log %11 : vector<8x1xf32>
    %13 = arith.addf %12, %6 : vector<8x1xf32>
    %14 = vector.broadcast %13 : vector<8x1xf32> to vector<8x32xf32>
    %15 = arith.subf %4, %14 : vector<8x32xf32>
    %cst_6 = arith.constant dense<0xFF800000> : vector<4x8xf32>
    %16 = vector.multi_reduction <maximumf>, %1, %cst_6 [2] : vector<4x8x32xf32> to vector<4x8xf32>
    %17 = vector.shape_cast %16 : vector<4x8xf32> to vector<4x8x1xf32>
    %18 = vector.broadcast %17 : vector<4x8x1xf32> to vector<4x8x32xf32>
    %19 = arith.subf %1, %18 : vector<4x8x32xf32>
    %20 = math.exp %19 : vector<4x8x32xf32>
    %cst_7 = arith.constant dense<0.000000e+00> : vector<4x8xf32>
    %21 = vector.multi_reduction <add>, %20, %cst_7 [2] : vector<4x8x32xf32> to vector<4x8xf32>
    %22 = vector.shape_cast %21 : vector<4x8xf32> to vector<4x8x1xf32>
    %23 = math.log %22 : vector<4x8x1xf32>
    %24 = vector.broadcast %23 : vector<4x8x1xf32> to vector<4x8x32xf32>
    %25 = arith.subf %19, %24 : vector<4x8x32xf32>
    %26 = tpu.reciprocal %22 : vector<4x8x1xf32> -> vector<4x8x1xf32>
    %27 = vector.broadcast %26 : vector<4x8x1xf32> to vector<4x8x32xf32>
    %28 = arith.mulf %20, %27 : vector<4x8x32xf32>
    %29 = vector.shape_cast %15 : vector<8x32xf32> to vector<1x8x32xf32>
    %30 = vector.broadcast %29 : vector<1x8x32xf32> to vector<4x8x32xf32>
    %31 = arith.subf %25, %30 : vector<4x8x32xf32>
    %32 = arith.mulf %28, %31 : vector<4x8x32xf32>
    %33 = tpu.iota {dimensions = array<i32: 0>} : vector<4x1x1xi32>
    %34 = vector.broadcast %0 : i32 to vector<4x1x1xi32>
    %35 = arith.cmpi eq, %33, %34 : vector<4x1x1xi32>
    %cst_8 = arith.constant 0.000000e+00 : f32
    %36 = vector.shape_cast %35 : vector<4x1x1xi1> to vector<4x1x1xi1>
    %37 = vector.broadcast %36 : vector<4x1x1xi1> to vector<4x8x32xi1>
    %38 = vector.broadcast %cst_8 : f32 to vector<4x8x32xf32>
    %39 = arith.select %37, %38, %32 : vector<4x8x32xi1>, vector<4x8x32xf32>
    %cst_9 = arith.constant 0.000000e+00 : f32
    %40 = vector.broadcast %cst_9 : f32 to vector<8x128xf32>
    %41 = vector.shape_cast %39 : vector<4x8x32xf32> to vector<1x4x8x32xf32>
    %cst_10 = arith.constant dense<0.000000e+00> : vector<1xf32>
    %42 = vector.multi_reduction <add>, %41, %cst_10 [1, 2, 3] : vector<1x4x8x32xf32> to vector<1xf32>
    %43 = vector.shape_cast %42 : vector<1xf32> to vector<1x1x1x1xf32>
    %44 = vector.extract %43[0, 0, 0, 0] : f32 from vector<1x1x1x1xf32>
    %45 = vector.broadcast %44 : f32 to vector<8x128xf32>
    %46 = arith.addf %40, %45 : vector<8x128xf32>
    %c0_11 = arith.constant 0 : index
    %c0_12 = arith.constant 0 : index
    %47 = vector.load %arg3[%c0_11, %c0_12] : memref<8x128xf32, #tpu.memory_space<vmem>>, vector<8x128xf32>
    tpu.vector_store %arg3[%c0_11, %c0_12], %46 {strides = array<i32>} : memref<8x128xf32, #tpu.memory_space<vmem>>, vector<8x128xf32>,
    return
  }
  func.func @transform_0(%arg0: i32) -> i32 {
    %c0_i32 = arith.constant 0 : i32
    %c0_i32_0 = arith.constant 0 : i32
    return %c0_i32 : i32
  }
  func.func @transform_1(%arg0: i32) -> (i32, i32, i32) {
    %c0_i32 = arith.constant 0 : i32
    %c0_i32_0 = arith.constant 0 : i32
    %c0_i32_1 = arith.constant 0 : i32
    %c0_i32_2 = arith.constant 0 : i32
    return %c0_i32, %c0_i32_0, %c0_i32_1 : i32, i32, i32
  }
  func.func @transform_2(%arg0: i32) -> (i32, i32) {
    %c0_i32 = arith.constant 0 : i32
    %c0_i32_0 = arith.constant 0 : i32
    %c0_i32_1 = arith.constant 0 : i32
    return %c0_i32, %c0_i32_0 : i32, i32
  }
}

</mosaic_0001>

<bundles_post_ra>
// kernel: tpu_custom_call.1
= control target key start
LH: loop header
LB: loop body
LE: loop exit
PB: predicated region body
PF: predicated region fallthrough
CT: control target
= control target key end

     0   :  { %8 = vsyncpa [#allocation4], 0  ;;  %s321_s0 = inlined_call_operand.<no memory space> [shape: s32[1], index: 0, kind: input, shape index: {}]   ;;  %s322_s1 = inlined_call_operand.hbm [shape: f32[4,8,32], index: 1, kind: input, shape index: {}]   ;;  %s323_s2 = inlined_call_operand.hbm [shape: f32[8,128], index: 2, kind: output, shape index: {}]  }
   0x1   :  { %9 = vsyncpa [#allocation5], 0  ;;  %s249_s9 = smov [#allocation3]   ;;  %s201_s13 = scalar_lea.hbm %s322_s1, 512 }
   0x2   :  { %s17_s10 = sshll.u32 %s249_s9, 4  ;;  %p202_p0 = scmp.ne.s32.totalorder %s322_s1, %s201_s13  ;;  %s18_s10 = int_to_ptr.vmem [resolvable:$true] %s17_s10 }
   0x3   :  { %p205_p1 = scmp.lt.u32.totalorder %s201_s13, %s322_s1 }
   0x5   :  { %p207_p2 = pnand %p205_p1, %p202_p0 }
   0x7   :  { %210 = shalt.err (!%p207_p2)
}
   0x8   :  { %s211_s18 = scalar_lea.vmem %s18_s10, 512  ;;  %p216_p4 = scmp.lt.s32.totalorder %s18_s10, %s18_s10 }
   0x9   :  { %p212_p3 = scmp.ne.s32.totalorder %s18_s10, %s211_s18  ;;  %p217_p5 = scmp.lt.s32.totalorder %s211_s18, %s211_s18 }
   0xb   :  { %p218_p6 = por %p217_p5, %p216_p4 }
   0xd   :  { %p219_p7 = pnand %p218_p6, %p212_p3 }
   0xf   :  { %222 = shalt.err (!%p219_p7)
}
  0x10   :  { %s250_s19 = smov 128   ;;  %s251_s20 = smov 8  }
  0x11   :  { %23 = dma.hbm_to_vmem [thread:$0]  %s322_s1, 512, %s18_s10, [#allocation4], %s250_s19, %s250_s19, %s251_s20  }
  0x12   :  { %245 = dma.done.wait [#allocation4], 512  }
  0x13   :  { %246 = vsyncadd [#allocation4], 4294966784  ;;  %s166_s25 = sshll.u32 %s321_s0, 3  ;;  %vm35_vm0 = vcmask 261120   ;;  %v29_v1 = vld [vmem:[#allocation3 + $0x8] sm:$0xff]  ;;  %v28_v2 = vld [vmem:[#allocation3] sm:$0xff]  ;;  %v113_v51 = vstv %s321_s0 }
  0x14   :  { %s33_s26 = scalar_lea.vmem [#allocation3], %s166_s25  ;;  %v52_v4 = vsel %vm35_vm0, %v29_v1, -inf  ;;  %v30_v5 = vld [vmem:[#allocation3 + $0x10] sm:$0xff]  ;;  %v49_v6 = vsel %vm35_vm0, %v28_v2, -inf  ;;  %v31_v8 = vld [vmem:[#allocation3 + $0x18] sm:$0xff]  ;;  %vm115_vm1 = vcmp.eq.s32.totalorder %v113_v51, 1 }
  0x15   :  { %v283_v0 = vld [vmem:[%s33_s26] sm:$0xff]  ;;  %53 = vmax.xlane.f32.xlu1 %v52_v4  ;;  %v55_v7 = vsel %vm35_vm0, %v30_v5, -inf  ;;  %v58_v9 = vsel %vm35_vm0, %v31_v8, -inf  ;;  %vm114_vm2 = vcmp.eq.s32.totalorder %v113_v51, 0  ;;  %vm116_vm3 = vcmp.eq.s32.totalorder %v113_v51, 2  ;;  %s252_s0 = smov [#allocation6]  }
  0x16   :  { %v36_v3 = vsel %vm35_vm0, %v283_v0, -inf  ;;  %vm117_vm4 = vcmp.eq.s32.totalorder %v113_v51, 3  ;;  %s155_s28 = sshll.u32 %s252_s0, 4  ;;  %s156_s28 = int_to_ptr.vmem [resolvable:$true] %s155_s28 }
  0x17   :  { %37 = vmax.xlane.f32.xlu0 %v36_v3  ;;  %s223_s30 = scalar_lea.vmem %s156_s28, 128  ;;  %p228_p9 = scmp.lt.s32.totalorder %s156_s28, %s156_s28 }
  0x18   :  { %p224_p8 = scmp.ne.s32.totalorder %s156_s28, %s223_s30  ;;  %p229_p10 = scmp.lt.s32.totalorder %s223_s30, %s223_s30 }
  0x19   :  { %56 = vmax.xlane.f32.xlu1 %v55_v7 }
  0x1a   :  { %p230_p11 = por %p229_p10, %p228_p9 }
  0x1b   :  { %50 = vmax.xlane.f32.xlu0 %v49_v6 }
  0x1c   :  { %p231_p12 = pnand %p230_p11, %p224_p8 }
  0x1f   :  { %59 = vmax.xlane.f32.xlu0 %v58_v9 }
  0xa2   :  { %v54_v11 = vpop.xlane.xlu1 %53 }
  0xa3   :  { %v62_v13 = vsub.f32 %v29_v1, %v54_v11 }
  0xa4   :  { %v38_v10 = vpop.xlane.xlu0 %37 }
  0xa5   :  { %v39_v12 = vsub.f32 %v283_v0, %v38_v10  ;;  %v67_v15 = vmul.f32 1.442695, %v62_v13 }
  0xa6   :  { %v57_v17 = vpop.xlane.xlu1 %56 }
  0xa7   :  { %v40_v14 = vmul.f32 1.442695, %v39_v12  ;;  %v292_v19 = vsub.f32 %v30_v5, %v57_v17 }
  0xa8   :  { %v51_v16 = vpop.xlane.xlu0 %50 }
  0xa9   :  { %173 = vpow2.f32 %v40_v14  ;;  %v61_v18 = vsub.f32 %v28_v2, %v51_v16  ;;  %v69_v21 = vmul.f32 1.442695, %v292_v19 }
  0xaa   :  { %175 = vpow2.f32 %v67_v15 }
  0xab   :  { %v65_v20 = vmul.f32 1.442695, %v61_v18 }
  0xac   :  { %v60_v22 = vpop.xlane.xlu0 %59 }
  0xad   :  { %177 = vpow2.f32 %v65_v20  ;;  %v64_v23 = vsub.f32 %v31_v8, %v60_v22 }
  0xae   :  { %179 = vpow2.f32 %v69_v21 }
  0xaf   :  { %v71_v24 = vmul.f32 1.442695, %v64_v23 }
  0xb1   :  { %181 = vpow2.f32 %v71_v24 }
  0xb3   :  { %v174_v25 = vpop.eup %173 }
  0xb4   :  { %v176_v26 = vpop.eup %175  ;;  %v42_v27 = vsel %vm35_vm0, %v174_v25, 0.0 }
  0xb5   :  { %43 = vadd.xlane.f32.xlu1 %v42_v27  ;;  %v76_v28 = vsel %vm35_vm0, %v176_v26, 0.0 }
  0xb7   :  { %v178_v29 = vpop.eup %177 }
  0xb8   :  { %v180_v30 = vpop.eup %179  ;;  %v73_v31 = vsel %vm35_vm0, %v178_v29, 0.0 }
  0xb9   :  { %77 = vadd.xlane.f32.xlu1 %v76_v28  ;;  %74 = vadd.xlane.f32.xlu0 %v73_v31  ;;  %v79_v32 = vsel %vm35_vm0, %v180_v30, 0.0 }
  0xbb   :  { %v182_v33 = vpop.eup %181 }
  0xbc   :  { %v82_v34 = vsel %vm35_vm0, %v182_v33, 0.0 }
  0xbd   :  { %80 = vadd.xlane.f32.xlu0 %v79_v32  ;;  %83 = vadd.xlane.f32.xlu1 %v82_v34 }
 0x142   :  { %v44_v35 = vpop.xlane.xlu1 %43 }
 0x143   :  { %183 = vlog2.f32 %v44_v35 }
 0x146   :  { %v78_v36 = vpop.xlane.xlu1 %77  ;;  %v75_v37 = vpop.xlane.xlu0 %74 }
 0x147   :  { %185 = vlog2.f32 %v78_v36 }
 0x148   :  { %187 = vrcp.f32 %v78_v36 }
 0x149   :  { %189 = vlog2.f32 %v75_v37 }
 0x14a   :  { %191 = vrcp.f32 %v75_v37  ;;  %v84_v38 = vpop.xlane.xlu1 %83  ;;  %v81_v39 = vpop.xlane.xlu0 %80 }
 0x14b   :  { %193 = vlog2.f32 %v84_v38 }
 0x14c   :  { %195 = vrcp.f32 %v84_v38 }
 0x14d   :  { %v184_v40 = vpop.eup %183  ;;  %197 = vlog2.f32 %v81_v39 }
 0x14e   :  { %v46_v41 = vmul.f32 0.6931472, %v184_v40  ;;  %199 = vrcp.f32 %v81_v39 }
 0x150   :  { %v47_v42 = vadd.f32 %v46_v41, %v38_v10 }
 0x151   :  { %v186_v43 = vpop.eup %185 }
 0x152   :  { %v188_v44 = vpop.eup %187  ;;  %v88_v45 = vmul.f32 0.6931472, %v186_v43  ;;  %v48_v48 = vsub.f32 %v283_v0, %v47_v42 }
 0x153   :  { %v190_v46 = vpop.eup %189  ;;  %v102_v57 = vmul.f32 %v188_v44, %v176_v26 }
 0x154   :  { %v192_v47 = vpop.eup %191  ;;  %v94_v49 = vsub.f32 %v62_v13, %v88_v45  ;;  %v86_v50 = vmul.f32 0.6931472, %v190_v46 }
 0x155   :  { %v194_v52 = vpop.eup %193  ;;  %v101_v59 = vmul.f32 %v192_v47, %v178_v29 }
 0x156   :  { %v196_v53 = vpop.eup %195  ;;  %v106_v54 = vsub.f32 %v94_v49, %v48_v48  ;;  %v93_v55 = vsub.f32 %v61_v18, %v86_v50  ;;  %v92_v56 = vmul.f32 0.6931472, %v194_v52 }
 0x157   :  { %v198_v58 = vpop.eup %197  ;;  %v104_v1 = vmul.f32 %v196_v53, %v182_v33 }
 0x158   :  { %v105_v60 = vsub.f32 %v93_v55, %v48_v48  ;;  %v96_v61 = vsub.f32 %v64_v23, %v92_v56  ;;  %v90_v62 = vmul.f32 0.6931472, %v198_v58  ;;  %v110_v63 = vmul.f32 %v106_v54, %v102_v57  ;;  %v200_v0 = vpop.eup %199 }
 0x159   :  { %v103_v7 = vmul.f32 %v200_v0, %v180_v30 }
 0x15a   :  { %v108_v2 = vsub.f32 %v96_v61, %v48_v48  ;;  %v95_v3 = vsub.f32 %v292_v19, %v90_v62  ;;  %v109_v4 = vmul.f32 %v105_v60, %v101_v59  ;;  %v127_v5 = vsel %vm115_vm1, 0.0, %v110_v63 }
 0x15b   :  { %v131_v11 = vsel %vm35_vm0, %v127_v5, 0.0 }
 0x15c   :  { %v107_v6 = vsub.f32 %v95_v3, %v48_v48  ;;  %v112_v8 = vmul.f32 %v108_v2, %v104_v1  ;;  %v126_v9 = vsel %vm114_vm2, 0.0, %v109_v4 }
 0x15d   :  { %v130_v10 = vsel %vm35_vm0, %v126_v9, 0.0 }
 0x15e   :  { %v111_v12 = vmul.f32 %v107_v6, %v103_v7  ;;  %v129_v14 = vsel %vm117_vm4, 0.0, %v112_v8  ;;  %v132_v15 = vadd.f32 %v131_v11, %v130_v10 }
 0x15f   :  { %v135_v18 = vsel %vm35_vm0, %v129_v14, 0.0 }
 0x160   :  { %v128_v13 = vsel %vm116_vm3, 0.0, %v111_v12 }
 0x161   :  { %v133_v16 = vsel %vm35_vm0, %v128_v13, 0.0 }
 0x162   :  { %v134_v17 = vadd.f32 %v133_v16, %v132_v15 }
 0x164   :  { %v136_v19 = vadd.f32 %v135_v18, %v134_v17 }
 0x166   :  { %137 = vadd.xlane.f32.xlu0 %v136_v19 }
 0x1f3   :  { %v138_v20 = vpop.xlane.xlu0 %137 }
 0x1f4   :  { %v139_v21 = vrot.slane %v138_v20, 4 }
 0x1f6   :  { %v140_v22 = vadd.f32 %v139_v21, %v138_v20 }
 0x1f8   :  { %v141_v23 = vrot.slane %v140_v22, 2 }
 0x1fa   :  { %v142_v24 = vadd.f32 %v141_v23, %v140_v22 }
 0x1fc   :  { %v143_v25 = vrot.slane %v142_v24, 1 }
 0x1fe   :  { %v144_v26 = vadd.f32 %v143_v25, %v142_v24 }
 0x200   :  { %167 = vpush %v144_v26 }
 0x231   :  { %s168_s29 = spop %167 }
 0x232   :  { %v146_v27 = vstv %s168_s29 }
 0x233   :  { %148 = vst [vmem:[#allocation6] sm:$0xff] %v146_v27 }
 0x234   :  { %234 = shalt.err (!%p231_p12)
}
 0x235   :  { %s235_s5 = scalar_lea.hbm %s323_s2, 128 }
 0x236   :  { %p236_p13 = scmp.ne.s32.totalorder %s323_s2, %s235_s5  ;;  %p239_p0 = scmp.lt.u32.totalorder %s235_s5, %s323_s2 }
 0x238   :  { %p241_p1 = pnand %p239_p0, %p236_p13 }
 0x23a   :  { %244 = shalt.err (!%p241_p1)
}
 0x23b   :  { %158 = dma.vmem_to_hbm [thread:$0]  %s156_s28, 128, %s323_s2, [#allocation5]  }
 0x23c   :  { %247 = dma.done.wait [#allocation5], 128  }
 0x23d   :  { %248 = vsyncadd [#allocation5], 4294967168 }
 0x23e   :  { %162 = vsyncpa [#allocation4], 1 }
 0x23f   :  { %163 = vsyncpa [#allocation5], 1 }

</bundles_post_ra>
